<compile_context>
chip_gen: v5e
topology: v5e:2x2
jax: 0.10.0
libtpu: 0.0.40
codegen_flags: <defaults>
</compile_context>

<pallas_src>
import functools
import math

import jax
import jax.numpy as jnp
from jax import lax
from jax.experimental import pallas as pl
from jax.experimental.pallas import tpu as pltpu


# ---------------------------------------------------------------------------
# Fused encoder-layer kernel: one grid step == (batch element, query tile)
# ---------------------------------------------------------------------------
def _encoder_layer_kernel(src_ref, pos_ref, wqkv_ref, wo_ref, w1_ref, w2_ref,
                          bqkv_ref, vecs_ref, b1_ref, out_ref, *,
                          nhead, tq, activation, normalize_before, eps,
                          compute_dtype):
    H = nhead
    _, S, D = src_ref.shape
    Dh = D // H
    cd = compute_dtype
    f32 = jnp.float32

    j = pl.program_id(1)
    q0 = pl.multiple_of(j * tq, tq)
    qrows = pl.ds(q0, tq)

    x_full = src_ref[0]                       # (S, D) f32 (full sequence, resident)
    p_full = pos_ref[0]                       # (S, D)
    x_q = src_ref[0, qrows, :]                # (tq, D) query tile
    p_q = pos_ref[0, qrows, :]                # (tq, D)

    # Packed width-D vectors: [gamma1, beta1, gamma2, beta2, out_proj_bias, linear2_bias]
    g1, be1 = vecs_ref[0:1, :], vecs_ref[1:2, :]
    g2, be2 = vecs_ref[2:3, :], vecs_ref[3:4, :]
    bo, b2 = vecs_ref[4:5, :], vecs_ref[5:6, :]
    b1 = b1_ref[...]                          # (1, Dff)

    wqkv = wqkv_ref[...]                      # (3H, D, Dh)   rows [Q heads | K heads | V heads]
    wo = wo_ref[...]                          # (H, Dh, D)
    w1 = w1_ref[...]                          # (D, Dff)
    w2 = w2_ref[...]                          # (Dff, D)
    bqkv = bqkv_ref[...]                      # (3H, 1, Dh) f32

    def layer_norm(v, g, b):                  # f32 stats
        mean = jnp.mean(v, axis=-1, keepdims=True)
        c = v - mean
        var = jnp.mean(c * c, axis=-1, keepdims=True)
        return c * lax.rsqrt(var + eps) * g + b

    def act_fn(v):
        if activation == "relu":
            return jnp.maximum(v, 0.0)
        if activation == "gelu":              # exact erf GELU (F.gelu default)
            return 0.5 * v * (1.0 + lax.erf(v * (1.0 / math.sqrt(2.0))))
        # TODO(synk): 'glu' halves the FFN width (different shapes); not supported.
        raise NotImplementedError(f"activation {activation!r} not supported")

    def proj_heads(x, w, b):
        """x:(N,D), w:(nH,D,Dh), b:(nH,1,Dh) -> (nH,N,Dh) f32 via ONE batched MXU matmul."""
        nH = w.shape[0]
        xb = jnp.broadcast_to(x.astype(cd)[None], (nH,) + x.shape)
        y = jnp.einsum("hnd,hdf->hnf", xb, w, preferred_element_type=f32)
        return y + b

    def mha(qk_q, qk_full, v_full):
        scale = 1.0 / math.sqrt(Dh)
        if tq == S:
            # Single query tile: q and k share the same input -> fused QK projection
            # (one batched matmul over 2H heads).
            qk_heads = proj_heads(qk_full, wqkv[0:2 * H], bqkv[0:2 * H])      # (2H, S, Dh)
            q_h, k_h = qk_heads[0:H], qk_heads[H:2 * H]
        else:
            q_h = proj_heads(qk_q, wqkv[0:H], bqkv[0:H])                      # (H, tq, Dh)
            k_h = proj_heads(qk_full, wqkv[H:2 * H], bqkv[H:2 * H])           # (H, S, Dh)
        v_h = proj_heads(v_full, wqkv[2 * H:3 * H], bqkv[2 * H:3 * H])        # (H, S, Dh)

        q_h = q_h * scale                                                      # f32
        s = jnp.einsum("hqe,hke->hqk", q_h.astype(cd), k_h.astype(cd),
                       preferred_element_type=f32)                             # (H, tq, S)
        s = s - jnp.max(s, axis=-1, keepdims=True)                             # f32 softmax
        p = jnp.exp(s)
        inv = pl.reciprocal(jnp.sum(p, axis=-1, keepdims=True),
                            approx=(cd != jnp.float32))
        p = p * inv
        # TODO(synk): attention dropout / src_mask / key_padding_mask are not applied
        # (eval mode, None-mask path only).
        o_h = jnp.einsum("hqk,hke->hqe", p.astype(cd), v_h.astype(cd),
                         preferred_element_type=f32)                           # (H, tq, Dh)
        # concat_h(o_h) @ Wo == sum_h o_h @ Wo[h] : batched matmul + head reduce,
        # no in-kernel concatenate / head transpose.
        o = jnp.einsum("hqe,hed->hqd", o_h.astype(cd), wo,
                       preferred_element_type=f32)                             # (H, tq, D)
        return jnp.sum(o, axis=0) + bo                                         # (tq, D)

    def ffn(v):                                # (tq, D) f32
        h = jnp.dot(v.astype(cd), w1, preferred_element_type=f32) + b1
        h = act_fn(h)
        # TODO(synk): nn.Dropout layers are identity in eval/inference mode.
        return jnp.dot(h.astype(cd), w2, preferred_element_type=f32) + b2

    if normalize_before:                       # forward_pre
        s2_full = layer_norm(x_full, g1, be1)
        s2_q = layer_norm(x_q, g1, be1)        # row-wise LN == tile of s2_full
        a = mha(s2_q + p_q, s2_full + p_full, s2_full)
        xt = x_q + a
        out = xt + ffn(layer_norm(xt, g2, be2))
    else:                                      # forward_post (default)
        a = mha(x_q + p_q, x_full + p_full, x_full)
        xt = layer_norm(x_q + a, g1, be1)
        out = layer_norm(xt + ffn(xt), g2, be2)

    out_ref[0] = out.astype(out_ref.dtype)


# ---------------------------------------------------------------------------
# Wrapper
# ---------------------------------------------------------------------------
def transformer_encoder_layer(src, params, pos=None, *, nhead,
                              activation="relu", normalize_before=False,
                              eps=1e-5, compute_dtype=jnp.float32, q_tile=128):
    """Pallas equivalent of TransformerEncoderLayer.forward (inference mode).

    src, pos      : (S, B, D) float32 (torch MultiheadAttention seq-first layout).
    params        : dict of torch-layout weights (Linear weights are (out, in)).
    compute_dtype : dtype fed to the MXU (jnp.bfloat16 halves weight bytes on
                    v6e/v7x; accumulation, softmax and LayerNorm stay f32).
    Returns       : (S, B, D) float32.
    """
    S, B, D = src.shape
    assert D % nhead == 0
    Dh = D // nhead
    f32 = jnp.float32
    cd = compute_dtype
    if pos is None:
        pos = jnp.zeros_like(src)
    # TODO(synk): src_mask / src_key_padding_mask are not supported (None path only).

    in_w = jnp.asarray(params["in_proj_weight"], f32)    # (3D, D) torch (out, in)
    in_b = jnp.asarray(params["in_proj_bias"], f32)      # (3D,)
    out_w = jnp.asarray(params["out_proj_weight"], f32)  # (D, D)
    out_bias = jnp.asarray(params["out_proj_bias"], f32)
    w1 = jnp.asarray(params["linear1_weight"], f32)      # (Dff, D)
    b1 = jnp.asarray(params["linear1_bias"], f32)
    w2 = jnp.asarray(params["linear2_weight"], f32)      # (D, Dff)
    b2 = jnp.asarray(params["linear2_bias"], f32)
    g1 = jnp.asarray(params["norm1_weight"], f32)
    be1 = jnp.asarray(params["norm1_bias"], f32)
    g2 = jnp.asarray(params["norm2_weight"], f32)
    be2 = jnp.asarray(params["norm2_bias"], f32)
    Dff = w1.shape[0]

    def per_head(w):  # torch (D_out=D, D_in=D) -> (H, D_in, Dh); head h = output rows h*Dh:(h+1)*Dh
        return jnp.transpose(w.reshape(nhead, Dh, D), (0, 2, 1))

    # Fused per-head QKV weights/biases: rows [0,H)=Q, [H,2H)=K, [2H,3H)=V.
    wqkv_h = jnp.concatenate(
        [per_head(in_w[:D]), per_head(in_w[D:2 * D]), per_head(in_w[2 * D:])],
        axis=0).astype(cd)                                # (3H, D, Dh)
    bqkv_h = in_b.reshape(3 * nhead, 1, Dh)               # (3H, 1, Dh) f32
    wo_h = out_w.T.reshape(nhead, Dh, D).astype(cd)       # (H, Dh, D)
    w1_k = w1.T.astype(cd)                                # (D, Dff)
    w2_k = w2.T.astype(cd)                                # (Dff, D)

    # Pack all width-D vectors into a single sublane-aligned (8, D) array.
    vecs = jnp.zeros((8, D), f32)
    vecs = (vecs.at[0].set(g1).at[1].set(be1).at[2].set(g2).at[3].set(be2)
                 .at[4].set(out_bias).at[5].set(b2))
    b1_row = b1.reshape(1, Dff)

    # Sequence tiling: query tiles of size tq (full-S fallback if not divisible).
    tq = S if S <= q_tile else (q_tile if S % q_tile == 0 else S)
    nq = S // tq

    # Batch-major so each grid step owns one batch element; d_model stays the lane dim.
    src_b = jnp.transpose(src, (1, 0, 2)).astype(f32)
    pos_b = jnp.transpose(pos, (1, 0, 2)).astype(f32)

    kernel = functools.partial(
        _encoder_layer_kernel, nhead=nhead, tq=tq, activation=activation,
        normalize_before=normalize_before, eps=float(eps), compute_dtype=cd)

    def fullspec(shape):
        return pl.BlockSpec(shape, lambda b, j: (0,) * len(shape))

    out_b = pl.pallas_call(
        kernel,
        out_shape=jax.ShapeDtypeStruct((B, S, D), f32),
        grid=(B, nq),
        in_specs=[
            pl.BlockSpec((1, S, D), lambda b, j: (b, 0, 0)),   # src (full seq; resident across j)
            pl.BlockSpec((1, S, D), lambda b, j: (b, 0, 0)),   # pos
            fullspec((3 * nhead, D, Dh)),                      # fused per-head QKV weights
            fullspec((nhead, Dh, D)),                          # per-head output projection
            fullspec((D, Dff)),                                # linear1
            fullspec((Dff, D)),                                # linear2
            fullspec((3 * nhead, 1, Dh)),                      # per-head QKV biases
            fullspec((8, D)),                                  # packed LN params + biases
            fullspec((1, Dff)),                                # linear1 bias
        ],
        out_specs=pl.BlockSpec((1, tq, D), lambda b, j: (b, j, 0)),
        compiler_params=pltpu.CompilerParams(
            dimension_semantics=("parallel", "parallel"),
            vmem_limit_bytes=32 * 1024 * 1024,                 # explicit budget (safe on v5e/v6e/v7x)
        ),
    )(src_b, pos_b, wqkv_h, wo_h, w1_k, w2_k, bqkv_h, vecs, b1_row)

    return jnp.transpose(out_b, (1, 0, 2))


# ---------------------------------------------------------------------------
# Pure-JAX reference mirroring the PyTorch math (eval mode)
# ---------------------------------------------------------------------------
def _reference(src, params, pos, *, nhead, activation="relu",
               normalize_before=False, eps=1e-5):
    S, B, D = src.shape
    Dh = D // nhead

    def linear(x, w, b):                   # torch Linear: x @ W^T + b
        return jnp.einsum("sbi,oi->sbo", x, w) + b

    def ln(x, g, b):
        mean = jnp.mean(x, axis=-1, keepdims=True)
        var = jnp.mean((x - mean) ** 2, axis=-1, keepdims=True)
        return (x - mean) / jnp.sqrt(var + eps) * g + b

    in_w, in_b = params["in_proj_weight"], params["in_proj_bias"]

    def mha(qk, v_in):
        q = linear(qk, in_w[:D], in_b[:D]) * (Dh ** -0.5)
        k = linear(qk, in_w[D:2 * D], in_b[D:2 * D])
        v = linear(v_in, in_w[2 * D:], in_b[2 * D:])

        def split(t):                      # (S,B,D) -> (B*H, S, Dh), torch view order
            return t.reshape(S, B * nhead, Dh).transpose(1, 0, 2)

        qh, kh, vh = split(q), split(k), split(v)
        scores = jnp.einsum("bsd,btd->bst", qh, kh)
        probs = jax.nn.softmax(scores, axis=-1)
        o = jnp.einsum("bst,btd->bsd", probs, vh)
        o = o.transpose(1, 0, 2).reshape(S, B, D)
        return linear(o, params["out_proj_weight"], params["out_proj_bias"])

    act = {"relu": jax.nn.relu,
           "gelu": lambda x: jax.nn.gelu(x, approximate=False)}[activation]

    def ffn(x):
        h = act(linear(x, params["linear1_weight"], params["linear1_bias"]))
        return linear(h, params["linear2_weight"], params["linear2_bias"])

    if normalize_before:
        x = src
        s2 = ln(x, params["norm1_weight"], params["norm1_bias"])
        s2 = mha(s2 + pos, s2)
        x = x + s2
        s2 = ln(x, params["norm2_weight"], params["norm2_bias"])
        return x + ffn(s2)
    x = src
    s2 = mha(x + pos, x)
    x = ln(x + s2, params["norm1_weight"], params["norm1_bias"])
    return ln(x + ffn(x), params["norm2_weight"], params["norm2_bias"])


if __name__ == "__main__":
    key = jax.random.PRNGKey(0)
    S, B, D, H, Dff = 8, 2, 32, 4, 64          # seq=8, batch=2, d_model=32, 4 heads

    keys = jax.random.split(key, 16)
    s = 0.1
    params = {
        "in_proj_weight":  s * jax.random.normal(keys[0], (3 * D, D), jnp.float32),
        "in_proj_bias":    s * jax.random.normal(keys[1], (3 * D,), jnp.float32),
        "out_proj_weight": s * jax.random.normal(keys[2], (D, D), jnp.float32),
        "out_proj_bias":   s * jax.random.normal(keys[3], (D,), jnp.float32),
        "linear1_weight":  s * jax.random.normal(keys[4], (Dff, D), jnp.float32),
        "linear1_bias":    s * jax.random.normal(keys[5], (Dff,), jnp.float32),
        "linear2_weight":  s * jax.random.normal(keys[6], (D, Dff), jnp.float32),
        "linear2_bias":    s * jax.random.normal(keys[7], (D,), jnp.float32),
        "norm1_weight": 1.0 + s * jax.random.normal(keys[8], (D,), jnp.float32),
        "norm1_bias":          s * jax.random.normal(keys[9], (D,), jnp.float32),
        "norm2_weight": 1.0 + s * jax.random.normal(keys[10], (D,), jnp.float32),
        "norm2_bias":          s * jax.random.normal(keys[11], (D,), jnp.float32),
    }
    src = jax.random.normal(keys[12], (S, B, D), jnp.float32)
    pos = jax.random.normal(keys[13], (S, B, D), jnp.float32)

    # 1) post-norm, f32 MXU inputs
    out = transformer_encoder_layer(src, params, pos, nhead=H)
    jax.block_until_ready(out)
    ref = _reference(src, params, pos, nhead=H)
    assert out.shape == (S, B, D)
    err = float(jnp.max(jnp.abs(out - ref)))
    assert jnp.allclose(out, ref, atol=1e-4, rtol=1e-4), f"post f32 max err {err}"

    # 2) pre-norm, f32
    out_pre = transformer_encoder_layer(src, params, pos, nhead=H,
                                        normalize_before=True)
    ref_pre = _reference(src, params, pos, nhead=H, normalize_before=True)
    err = float(jnp.max(jnp.abs(out_pre - ref_pre)))
    assert jnp.allclose(out_pre, ref_pre, atol=1e-4, rtol=1e-4), f"pre f32 max err {err}"

    # 3) post-norm with bf16 MXU inputs (f32 accumulation / softmax / LayerNorm)
    out_bf16 = transformer_encoder_layer(src, params, pos, nhead=H,
                                         compute_dtype=jnp.bfloat16)
    err = float(jnp.max(jnp.abs(out_bf16 - ref)))
    assert jnp.allclose(out_bf16, ref, atol=5e-2, rtol=5e-2), f"post bf16 max err {err}"

    # 4) multi-tile path: S=256 with 128-row query tiles (exercises the
    #    sequence-tile grid axis and the non-fused Q/K projection branch).
    S2, B2 = 256, 1
    src2 = jax.random.normal(keys[14], (S2, B2, D), jnp.float32)
    pos2 = jax.random.normal(keys[15], (S2, B2, D), jnp.float32)
    out2 = transformer_encoder_layer(src2, params, pos2, nhead=H, q_tile=128)
    ref2 = _reference(src2, params, pos2, nhead=H)
    err = float(jnp.max(jnp.abs(out2 - ref2)))
    assert jnp.allclose(out2, ref2, atol=1e-4, rtol=1e-4), f"tiled f32 max err {err}"

    jax.block_until_ready((out, out_pre, out_bf16, out2))
    print("KERNEL_OK")
</pallas_src>

<mosaic_0001>
module attributes {stable_mosaic.version = 11 : i64} {
  func.func @_encoder_layer_kernel(%arg0: i32, %arg1: i32, %arg2: memref<1x8x32xf32, #tpu.memory_space<vmem>>, %arg3: memref<1x8x32xf32, #tpu.memory_space<vmem>>, %arg4: memref<12x32x8xf32, #tpu.memory_space<vmem>>, %arg5: memref<4x8x32xf32, #tpu.memory_space<vmem>>, %arg6: memref<32x64xf32, #tpu.memory_space<vmem>>, %arg7: memref<64x32xf32, #tpu.memory_space<vmem>>, %arg8: memref<12x1x8xf32, #tpu.memory_space<vmem>>, %arg9: memref<8x32xf32, #tpu.memory_space<vmem>>, %arg10: memref<1x64xf32, #tpu.memory_space<vmem>>, %arg11: memref<1x8x32xf32, #tpu.memory_space<vmem>>) attributes {dimension_semantics = [#tpu.dimension_semantics<parallel>, #tpu.dimension_semantics<parallel>], iteration_bounds = array<i64: 2, 1>, scalar_prefetch = 0 : i64, scratch_operands = 0 : i64, tpu.core_type = #tpu.core_type<tc>, window_params = [{transform_indices = @transform_0, window_bounds = array<i64: 1, 8, 32>}, {transform_indices = @transform_1, window_bounds = array<i64: 1, 8, 32>}, {pipeline_mode = #tpu.pipeline_mode<synchronous>, transform_indices = @transform_2, window_bounds = array<i64: 12, 32, 8>}, {pipeline_mode = #tpu.pipeline_mode<synchronous>, transform_indices = @transform_3, window_bounds = array<i64: 4, 8, 32>}, {pipeline_mode = #tpu.pipeline_mode<synchronous>, transform_indices = @transform_4, window_bounds = array<i64: 32, 64>}, {pipeline_mode = #tpu.pipeline_mode<synchronous>, transform_indices = @transform_5, window_bounds = array<i64: 64, 32>}, {pipeline_mode = #tpu.pipeline_mode<synchronous>, transform_indices = @transform_6, window_bounds = array<i64: 12, 1, 8>}, {pipeline_mode = #tpu.pipeline_mode<synchronous>, transform_indices = @transform_7, window_bounds = array<i64: 8, 32>}, {pipeline_mode = #tpu.pipeline_mode<synchronous>, transform_indices = @transform_8, window_bounds = array<i64: 1, 64>}, {transform_indices = @transform_9, window_bounds = array<i64: 1, 8, 32>}]} {
    %c8_i32 = arith.constant 8 : i32
    %0 = arith.muli %arg1, %c8_i32 : i32
    %1 = tpu.assume_multiple %0, 8 : i32
    %c0 = arith.constant 0 : index
    %c0_0 = arith.constant 0 : index
    %c0_1 = arith.constant 0 : index
    %2 = vector.load %arg2[%c0, %c0_0, %c0_1] : memref<1x8x32xf32, #tpu.memory_space<vmem>>, vector<1x8x32xf32>
    %3 = vector.shape_cast %2 : vector<1x8x32xf32> to vector<8x32xf32>
    %c0_2 = arith.constant 0 : index
    %c0_3 = arith.constant 0 : index
    %c0_4 = arith.constant 0 : index
    %4 = vector.load %arg3[%c0_2, %c0_3, %c0_4] : memref<1x8x32xf32, #tpu.memory_space<vmem>>, vector<1x8x32xf32>
    %5 = vector.shape_cast %4 : vector<1x8x32xf32> to vector<8x32xf32>
    %c0_5 = arith.constant 0 : index
    %6 = arith.index_cast %1 : i32 to index
    %c0_6 = arith.constant 0 : index
    %7 = vector.load %arg2[%c0_5, %6, %c0_6] : memref<1x8x32xf32, #tpu.memory_space<vmem>>, vector<1x8x32xf32>
    %8 = vector.shape_cast %7 : vector<1x8x32xf32> to vector<8x32xf32>
    %c0_7 = arith.constant 0 : index
    %c0_8 = arith.constant 0 : index
    %9 = vector.load %arg9[%c0_7, %c0_8] : memref<8x32xf32, #tpu.memory_space<vmem>>, vector<1x32xf32>
    %c1 = arith.constant 1 : index
    %c0_9 = arith.constant 0 : index
    %10 = vector.load %arg9[%c1, %c0_9] : memref<8x32xf32, #tpu.memory_space<vmem>>, vector<1x32xf32>
    %c2 = arith.constant 2 : index
    %c0_10 = arith.constant 0 : index
    %11 = vector.load %arg9[%c2, %c0_10] : memref<8x32xf32, #tpu.memory_space<vmem>>, vector<1x32xf32>
    %c3 = arith.constant 3 : index
    %c0_11 = arith.constant 0 : index
    %12 = vector.load %arg9[%c3, %c0_11] : memref<8x32xf32, #tpu.memory_space<vmem>>, vector<1x32xf32>
    %c4 = arith.constant 4 : index
    %c0_12 = arith.constant 0 : index
    %13 = vector.load %arg9[%c4, %c0_12] : memref<8x32xf32, #tpu.memory_space<vmem>>, vector<1x32xf32>
    %c5 = arith.constant 5 : index
    %c0_13 = arith.constant 0 : index
    %14 = vector.load %arg9[%c5, %c0_13] : memref<8x32xf32, #tpu.memory_space<vmem>>, vector<1x32xf32>
    %c0_14 = arith.constant 0 : index
    %c0_15 = arith.constant 0 : index
    %15 = vector.load %arg10[%c0_14, %c0_15] : memref<1x64xf32, #tpu.memory_space<vmem>>, vector<1x64xf32>
    %c0_16 = arith.constant 0 : index
    %c0_17 = arith.constant 0 : index
    %c0_18 = arith.constant 0 : index
    %16 = vector.load %arg4[%c0_16, %c0_17, %c0_18] : memref<12x32x8xf32, #tpu.memory_space<vmem>>, vector<12x32x8xf32>
    %c0_19 = arith.constant 0 : index
    %c0_20 = arith.constant 0 : index
    %c0_21 = arith.constant 0 : index
    %17 = vector.load %arg5[%c0_19, %c0_20, %c0_21] : memref<4x8x32xf32, #tpu.memory_space<vmem>>, vector<4x8x32xf32>
    %c0_22 = arith.constant 0 : index
    %c0_23 = arith.constant 0 : index
    %18 = vector.load %arg6[%c0_22, %c0_23] : memref<32x64xf32, #tpu.memory_space<vmem>>, vector<32x64xf32>
    %c0_24 = arith.constant 0 : index
    %c0_25 = arith.constant 0 : index
    %19 = vector.load %arg7[%c0_24, %c0_25] : memref<64x32xf32, #tpu.memory_space<vmem>>, vector<64x32xf32>
    %c0_26 = arith.constant 0 : index
    %c0_27 = arith.constant 0 : index
    %c0_28 = arith.constant 0 : index
    %20 = vector.load %arg8[%c0_26, %c0_27, %c0_28] : memref<12x1x8xf32, #tpu.memory_space<vmem>>, vector<12x1x8xf32>
    %21 = arith.addf %3, %5 : vector<8x32xf32>
    %22 = vector.extract_strided_slice %16 {offsets = [0, 0, 0], sizes = [8, 32, 8], strides = [1, 1, 1]} : vector<12x32x8xf32> to vector<8x32x8xf32>
    %23 = vector.extract_strided_slice %20 {offsets = [0, 0, 0], sizes = [8, 1, 8], strides = [1, 1, 1]} : vector<12x1x8xf32> to vector<8x1x8xf32>
    %24 = vector.shape_cast %21 : vector<8x32xf32> to vector<1x8x32xf32>
    %25 = vector.shape_cast %24 : vector<1x8x32xf32> to vector<1x8x32xf32>
    %26 = vector.broadcast %25 : vector<1x8x32xf32> to vector<8x8x32xf32>
    "tpu.trace_start"() <{level = 10 : i32, message = "hnd,hdf->hnf"}> : () -> ()
    %cst = arith.constant dense<0.000000e+00> : vector<8x8x8xf32>
    %27 = tpu.matmul %26, %22, %cst {dimension_numbers = #tpu.dot_dimension_numbers<[2], [1], [1], [2], [0, 0, 0, 1, 1, 2], [0], [0]>} : vector<8x8x32xf32>, vector<8x32x8xf32>, vector<8x8x8xf32> -> vector<8x8x8xf32>
    "tpu.trace_stop"() : () -> ()
    %28 = vector.broadcast %23 : vector<8x1x8xf32> to vector<8x8x8xf32>
    %29 = arith.addf %27, %28 : vector<8x8x8xf32>
    %30 = vector.extract_strided_slice %29 {offsets = [0, 0, 0], sizes = [4, 8, 8], strides = [1, 1, 1]} : vector<8x8x8xf32> to vector<4x8x8xf32>
    %31 = vector.extract_strided_slice %29 {offsets = [4, 0, 0], sizes = [4, 8, 8], strides = [1, 1, 1]} : vector<8x8x8xf32> to vector<4x8x8xf32>
    %32 = vector.extract_strided_slice %16 {offsets = [8, 0, 0], sizes = [4, 32, 8], strides = [1, 1, 1]} : vector<12x32x8xf32> to vector<4x32x8xf32>
    %33 = vector.extract_strided_slice %20 {offsets = [8, 0, 0], sizes = [4, 1, 8], strides = [1, 1, 1]} : vector<12x1x8xf32> to vector<4x1x8xf32>
    %34 = vector.shape_cast %3 : vector<8x32xf32> to vector<1x8x32xf32>
    %35 = vector.shape_cast %34 : vector<1x8x32xf32> to vector<1x8x32xf32>
    %36 = vector.broadcast %35 : vector<1x8x32xf32> to vector<4x8x32xf32>
    "tpu.trace_start"() <{level = 10 : i32, message = "hnd,hdf->hnf"}> : () -> ()
    %cst_29 = arith.constant dense<0.000000e+00> : vector<4x8x8xf32>
    %37 = tpu.matmul %36, %32, %cst_29 {dimension_numbers = #tpu.dot_dimension_numbers<[2], [1], [1], [2], [0, 0, 0, 1, 1, 2], [0], [0]>} : vector<4x8x32xf32>, vector<4x32x8xf32>, vector<4x8x8xf32> -> vector<4x8x8xf32>
    "tpu.trace_stop"() : () -> ()
    %38 = vector.broadcast %33 : vector<4x1x8xf32> to vector<4x8x8xf32>
    %39 = arith.addf %37, %38 : vector<4x8x8xf32>
    %cst_30 = arith.constant 0.353553385 : f32
    %40 = vector.broadcast %cst_30 : f32 to vector<4x8x8xf32>
    %41 = arith.mulf %30, %40 : vector<4x8x8xf32>
    "tpu.trace_start"() <{level = 10 : i32, message = "hqe,hke->hqk"}> : () -> ()
    %cst_31 = arith.constant dense<0.000000e+00> : vector<4x8x8xf32>
    %42 = tpu.matmul %41, %31, %cst_31 {dimension_numbers = #tpu.dot_dimension_numbers<[2], [2], [1], [1], [0, 0, 0, 1, 1, 1], [0], [0]>} : vector<4x8x8xf32>, vector<4x8x8xf32>, vector<4x8x8xf32> -> vector<4x8x8xf32>
    "tpu.trace_stop"() : () -> ()
    %cst_32 = arith.constant dense<0xFF800000> : vector<4x8xf32>
    %43 = vector.multi_reduction <maximumf>, %42, %cst_32 [2] : vector<4x8x8xf32> to vector<4x8xf32>
    %44 = vector.shape_cast %43 : vector<4x8xf32> to vector<4x8x1xf32>
    %45 = vector.broadcast %44 : vector<4x8x1xf32> to vector<4x8x8xf32>
    %46 = arith.subf %42, %45 : vector<4x8x8xf32>
    %47 = math.exp %46 : vector<4x8x8xf32>
    %cst_33 = arith.constant dense<0.000000e+00> : vector<4x8xf32>
    %48 = vector.multi_reduction <add>, %47, %cst_33 [2] : vector<4x8x8xf32> to vector<4x8xf32>
    %49 = vector.shape_cast %48 : vector<4x8xf32> to vector<4x8x1xf32>
    %50 = tpu.reciprocal %49 : vector<4x8x1xf32> -> vector<4x8x1xf32>
    %51 = vector.broadcast %50 : vector<4x8x1xf32> to vector<4x8x8xf32>
    %52 = arith.mulf %47, %51 : vector<4x8x8xf32>
    "tpu.trace_start"() <{level = 10 : i32, message = "hqk,hke->hqe"}> : () -> ()
    %cst_34 = arith.constant dense<0.000000e+00> : vector<4x8x8xf32>
    %53 = tpu.matmul %52, %39, %cst_34 {dimension_numbers = #tpu.dot_dimension_numbers<[2], [1], [1], [2], [0, 0, 0, 1, 1, 2], [0], [0]>} : vector<4x8x8xf32>, vector<4x8x8xf32>, vector<4x8x8xf32> -> vector<4x8x8xf32>
    "tpu.trace_stop"() : () -> ()
    "tpu.trace_start"() <{level = 10 : i32, message = "hqe,hed->hqd"}> : () -> ()
    %cst_35 = arith.constant dense<0.000000e+00> : vector<4x8x32xf32>
    %54 = tpu.matmul %53, %17, %cst_35 {dimension_numbers = #tpu.dot_dimension_numbers<[2], [1], [1], [2], [0, 0, 0, 1, 1, 2], [0], [0]>} : vector<4x8x8xf32>, vector<4x8x32xf32>, vector<4x8x32xf32> -> vector<4x8x32xf32>
    "tpu.trace_stop"() : () -> ()
    %cst_36 = arith.constant dense<0.000000e+00> : vector<8x32xf32>
    %55 = vector.multi_reduction <add>, %54, %cst_36 [0] : vector<4x8x32xf32> to vector<8x32xf32>
    %56 = vector.broadcast %13 : vector<1x32xf32> to vector<8x32xf32>
    %57 = arith.addf %55, %56 : vector<8x32xf32>
    %58 = arith.addf %8, %57 : vector<8x32xf32>
    %cst_37 = arith.constant dense<0.000000e+00> : vector<8xf32>
    %59 = vector.multi_reduction <add>, %58, %cst_37 [1] : vector<8x32xf32> to vector<8xf32>
    %60 = vector.shape_cast %59 : vector<8xf32> to vector<8x1xf32>
    %cst_38 = arith.constant 3.200000e+01 : f32
    %61 = vector.broadcast %cst_38 : f32 to vector<8x1xf32>
    %62 = arith.divf %60, %61 : vector<8x1xf32>
    %63 = vector.broadcast %62 : vector<8x1xf32> to vector<8x32xf32>
    %64 = arith.subf %58, %63 : vector<8x32xf32>
    %65 = arith.mulf %64, %64 : vector<8x32xf32>
    %cst_39 = arith.constant dense<0.000000e+00> : vector<8xf32>
    %66 = vector.multi_reduction <add>, %65, %cst_39 [1] : vector<8x32xf32> to vector<8xf32>
    %67 = vector.shape_cast %66 : vector<8xf32> to vector<8x1xf32>
    %cst_40 = arith.constant 3.200000e+01 : f32
    %68 = vector.broadcast %cst_40 : f32 to vector<8x1xf32>
    %69 = arith.divf %67, %68 : vector<8x1xf32>
    %cst_41 = arith.constant 9.99999974E-6 : f32
    %70 = vector.broadcast %cst_41 : f32 to vector<8x1xf32>
    %71 = arith.addf %69, %70 : vector<8x1xf32>
    %72 = math.rsqrt %71 : vector<8x1xf32>
    %73 = vector.broadcast %72 : vector<8x1xf32> to vector<8x32xf32>
    %74 = arith.mulf %64, %73 : vector<8x32xf32>
    %75 = vector.broadcast %9 : vector<1x32xf32> to vector<8x32xf32>
    %76 = arith.mulf %74, %75 : vector<8x32xf32>
    %77 = vector.broadcast %10 : vector<1x32xf32> to vector<8x32xf32>
    %78 = arith.addf %76, %77 : vector<8x32xf32>
    %cst_42 = arith.constant dense<0.000000e+00> : vector<8x64xf32>
    %79 = tpu.matmul %78, %18, %cst_42 {dimension_numbers = #tpu.dot_dimension_numbers<[1], [0], [0], [1], [0, 0, 1, 1], [], []>} : vector<8x32xf32>, vector<32x64xf32>, vector<8x64xf32> -> vector<8x64xf32>
    %80 = vector.broadcast %15 : vector<1x64xf32> to vector<8x64xf32>
    %81 = arith.addf %79, %80 : vector<8x64xf32>
    %cst_43 = arith.constant 0.000000e+00 : f32
    %82 = vector.broadcast %cst_43 : f32 to vector<8x64xf32>
    %83 = arith.maximumf %81, %82 : vector<8x64xf32>
    %cst_44 = arith.constant dense<0.000000e+00> : vector<8x32xf32>
    %84 = tpu.matmul %83, %19, %cst_44 {dimension_numbers = #tpu.dot_dimension_numbers<[1], [0], [0], [1], [0, 0, 1, 1], [], []>} : vector<8x64xf32>, vector<64x32xf32>, vector<8x32xf32> -> vector<8x32xf32>
    %85 = vector.broadcast %14 : vector<1x32xf32> to vector<8x32xf32>
    %86 = arith.addf %84, %85 : vector<8x32xf32>
    %87 = arith.addf %78, %86 : vector<8x32xf32>
    %cst_45 = arith.constant dense<0.000000e+00> : vector<8xf32>
    %88 = vector.multi_reduction <add>, %87, %cst_45 [1] : vector<8x32xf32> to vector<8xf32>
    %89 = vector.shape_cast %88 : vector<8xf32> to vector<8x1xf32>
    %cst_46 = arith.constant 3.200000e+01 : f32
    %90 = vector.broadcast %cst_46 : f32 to vector<8x1xf32>
    %91 = arith.divf %89, %90 : vector<8x1xf32>
    %92 = vector.broadcast %91 : vector<8x1xf32> to vector<8x32xf32>
    %93 = arith.subf %87, %92 : vector<8x32xf32>
    %94 = arith.mulf %93, %93 : vector<8x32xf32>
    %cst_47 = arith.constant dense<0.000000e+00> : vector<8xf32>
    %95 = vector.multi_reduction <add>, %94, %cst_47 [1] : vector<8x32xf32> to vector<8xf32>
    %96 = vector.shape_cast %95 : vector<8xf32> to vector<8x1xf32>
    %cst_48 = arith.constant 3.200000e+01 : f32
    %97 = vector.broadcast %cst_48 : f32 to vector<8x1xf32>
    %98 = arith.divf %96, %97 : vector<8x1xf32>
    %cst_49 = arith.constant 9.99999974E-6 : f32
    %99 = vector.broadcast %cst_49 : f32 to vector<8x1xf32>
    %100 = arith.addf %98, %99 : vector<8x1xf32>
    %101 = math.rsqrt %100 : vector<8x1xf32>
    %102 = vector.broadcast %101 : vector<8x1xf32> to vector<8x32xf32>
    %103 = arith.mulf %93, %102 : vector<8x32xf32>
    %104 = vector.broadcast %11 : vector<1x32xf32> to vector<8x32xf32>
    %105 = arith.mulf %103, %104 : vector<8x32xf32>
    %106 = vector.broadcast %12 : vector<1x32xf32> to vector<8x32xf32>
    %107 = arith.addf %105, %106 : vector<8x32xf32>
    %c0_50 = arith.constant 0 : index
    %c0_51 = arith.constant 0 : index
    %c0_52 = arith.constant 0 : index
    %108 = vector.load %arg11[%c0_50, %c0_51, %c0_52] : memref<1x8x32xf32, #tpu.memory_space<vmem>>, vector<1x8x32xf32>
    %109 = vector.shape_cast %108 : vector<1x8x32xf32> to vector<8x32xf32>
    %110 = vector.shape_cast %107 : vector<8x32xf32> to vector<1x8x32xf32>
    tpu.vector_store %arg11[%c0_50, %c0_51, %c0_52], %110 {strides = array<i32>} : memref<1x8x32xf32, #tpu.memory_space<vmem>>, vector<1x8x32xf32>,
    return
  }
  func.func @transform_0(%arg0: i32, %arg1: i32) -> (i32, i32, i32) {
    %c0_i32 = arith.constant 0 : i32
    %c0_i32_0 = arith.constant 0 : i32
    %c0_i32_1 = arith.constant 0 : i32
    return %arg0, %c0_i32, %c0_i32_0 : i32, i32, i32
  }
  func.func @transform_1(%arg0: i32, %arg1: i32) -> (i32, i32, i32) {
    %c0_i32 = arith.constant 0 : i32
    %c0_i32_0 = arith.constant 0 : i32
    %c0_i32_1 = arith.constant 0 : i32
    return %arg0, %c0_i32, %c0_i32_0 : i32, i32, i32
  }
  func.func @transform_2(%arg0: i32, %arg1: i32) -> (i32, i32, i32) {
    %c0_i32 = arith.constant 0 : i32
    %c0_i32_0 = arith.constant 0 : i32
    %c0_i32_1 = arith.constant 0 : i32
    %c0_i32_2 = arith.constant 0 : i32
    return %c0_i32, %c0_i32_0, %c0_i32_1 : i32, i32, i32
  }
  func.func @transform_3(%arg0: i32, %arg1: i32) -> (i32, i32, i32) {
    %c0_i32 = arith.constant 0 : i32
    %c0_i32_0 = arith.constant 0 : i32
    %c0_i32_1 = arith.constant 0 : i32
    %c0_i32_2 = arith.constant 0 : i32
    return %c0_i32, %c0_i32_0, %c0_i32_1 : i32, i32, i32
  }
  func.func @transform_4(%arg0: i32, %arg1: i32) -> (i32, i32) {
    %c0_i32 = arith.constant 0 : i32
    %c0_i32_0 = arith.constant 0 : i32
    %c0_i32_1 = arith.constant 0 : i32
    return %c0_i32, %c0_i32_0 : i32, i32
  }
  func.func @transform_5(%arg0: i32, %arg1: i32) -> (i32, i32) {
    %c0_i32 = arith.constant 0 : i32
    %c0_i32_0 = arith.constant 0 : i32
    %c0_i32_1 = arith.constant 0 : i32
    return %c0_i32, %c0_i32_0 : i32, i32
  }
  func.func @transform_6(%arg0: i32, %arg1: i32) -> (i32, i32, i32) {
    %c0_i32 = arith.constant 0 : i32
    %c0_i32_0 = arith.constant 0 : i32
    %c0_i32_1 = arith.constant 0 : i32
    %c0_i32_2 = arith.constant 0 : i32
    return %c0_i32, %c0_i32_0, %c0_i32_1 : i32, i32, i32
  }
  func.func @transform_7(%arg0: i32, %arg1: i32) -> (i32, i32) {
    %c0_i32 = arith.constant 0 : i32
    %c0_i32_0 = arith.constant 0 : i32
    %c0_i32_1 = arith.constant 0 : i32
    return %c0_i32, %c0_i32_0 : i32, i32
  }
  func.func @transform_8(%arg0: i32, %arg1: i32) -> (i32, i32) {
    %c0_i32 = arith.constant 0 : i32
    %c0_i32_0 = arith.constant 0 : i32
    %c0_i32_1 = arith.constant 0 : i32
    return %c0_i32, %c0_i32_0 : i32, i32
  }
  func.func @transform_9(%arg0: i32, %arg1: i32) -> (i32, i32, i32) {
    %c0_i32 = arith.constant 0 : i32
    %c0_i32_0 = arith.constant 0 : i32
    return %arg0, %arg1, %c0_i32 : i32, i32, i32
  }
}

</mosaic_0001>

<bundles_post_ra>
// kernel: tpu_custom_call.1
= control target key start
LH: loop header
LB: loop body
LE: loop exit
PB: predicated region body
PF: predicated region fallthrough
CT: control target
= control target key end

     0   :  { %14 = vsyncpa [#allocation3], 0  ;;  %s2029_s0 = inlined_call_operand.vmem [shape: f32[2,8,32], index: 0, kind: input, shape index: {}]   ;;  %s2030_s1 = inlined_call_operand.vmem [shape: f32[2,8,32], index: 1, kind: input, shape index: {}]   ;;  %s2031_s2 = inlined_call_operand.vmem [shape: f32[12,32,8], index: 2, kind: input, shape index: {}]   ;;  %s2032_s3 = inlined_call_operand.vmem [shape: f32[4,8,32], index: 3, kind: input, shape index: {}]   ;;  %s2033_s4 = inlined_call_operand.vmem [shape: f32[32,64], index: 4, kind: input, shape index: {}]   ;;  %s2034_s5 = inlined_call_operand.vmem [shape: f32[64,32], index: 5, kind: input, shape index: {}]   ;;  %s2035_s6 = inlined_call_operand.vmem [shape: f32[12,1,8], index: 6, kind: input, shape index: {}]   ;;  %s2036_s7 = inlined_call_operand.vmem [shape: f32[8,32], index: 7, kind: input, shape index: {}]   ;;  %s2037_s8 = inlined_call_operand.vmem [shape: f32[1,64], index: 8, kind: input, shape index: {}]   ;;  %s2038_s9 = inlined_call_operand.hbm [shape: f32[2,8,32], index: 9, kind: output, shape index: {}]  }
   0x1   :  { %16 = vsyncpa [#allocation3 + $0x1], 0  ;;  %s1612_s30 = smov 0   ;;  %s1614_s10 = smov 0  }
   0x2   :  { %s1616_s11 = smov 0   ;;  %s1618_s12 = smov 0  }
   0x3   :  { %s1620_s13 = smov 0   ;;  %s1622_s14 = smov 0  }
   0x4 LB: > { %2041 = sst [smem:[#allocation5_spill]] %s1555_s13  ;;  %s1342_s15 = sadd.s32 4294967295, %s1559_s14   ;;  %s1559_s14 = sphi %s1622_s14, %s22_s14   ;;  %s1555_s13 = sphi %s1620_s13, %s2048_s13   ;;  %s1551_s12 = sphi %s1618_s12, %s2047_s12   ;;  %s1547_s11 = sphi %s1616_s11, %s2051_s11   ;;  %s1543_s10 = sphi %s1614_s10, %s2050_s10   ;;  %s1539_s30 = sphi %s1612_s30, %s2049_s30  }
   0x5   : > { %s1343_s16 = sadd.s32 4294967294, %s1559_s14   ;;  %s34_s17 = sadd.s32 1, %s1555_s13 }
   0x6   : > { %s242_s18 = sadd.s32 1, %s1547_s11  ;;  %p36_p0 = scmp.ge.s32.totalorder %s34_s17, 2 }
   0x7   : > { %p252_p1 = scmp.ne.s32.totalorder %s1547_s11, %s1543_s10  ;;  %p253_p2 = scmp.eq.s32.totalorder %s1342_s15, 1 }
   0x8   : > { %p258_p3 = scmp.ne.s32.totalorder %s1543_s10, %s1539_s30  ;;  %s2053_s17 = smov (%p36_p0, %s34_s17), 0 }
   0x9   : > { %2042 = sst [smem:[#allocation6_spill]] %s2053_s17  ;;  %p1652_p4 = por %p253_p2, %p252_p1 }
   0xa   : > { %p259_p5 = scmp.eq.s32.totalorder %s1343_s16, 1  ;;  %s237_s20 = ssub.s32 %s1555_s13, %s2053_s17 }
   0xb   : > { %p1346_p6 = scmp.ge.s32.totalorder %s1559_s14, 1  ;;  %p240_p7 = scmp.eq.s32.totalorder %s237_s20, 0 }
   0xc   : > { %p1659_p8 = por %p259_p5, %p258_p3  ;;  %p312_p9 = scmp.lt.s32.totalorder %s1559_s14, 3 }
   0xd   : > { %s1665_s22 = scalar_select %p240_p7, %s1547_s11, %s242_s18  }
   0xe   : > { %p313_p10 = pnand %p1346_p6, %p312_p9 }
   0xf   : > { %2045 = sst [smem:[#allocation7_spill]] %s1665_s22  ;;  %p351_p11 = scmp.lt.s32.totalorder (!%p313_p10), %s1551_s12, 1 }
  0x10   : > { %316 = sbr.rel (%p313_p10) target bundleno = 1657 (0x679), region = 56 }
  0x15   : > { %v374_v0 = vld [vmem:[%s2031_s2 + $0x18] sm:$0xff]  ;;  %v373_v2 = vld [vmem:[%s2031_s2 + $0x10] sm:$0xff]  ;;  %v372_v4 = vld [vmem:[%s2031_s2 + $0x8] sm:$0xff]  ;;  %s352_s26 = scalar_select %p351_p11, %s1551_s12, 1  ;;  %vm472_vm0 = vcmask 261120   ;;  %vm735_vm1 = vcmask 64512  }
  0x16   : > { %v378_v1 = vld [vmem:[%s2031_s2 + $0x38] sm:$0xff]  ;;  %488 = vmatpush.msra.mxu0 %v374_v0  ;;  %v377_v3 = vld [vmem:[%s2031_s2 + $0x30] sm:$0xff]  ;;  %v376_v5 = vld [vmem:[%s2031_s2 + $0x28] sm:$0xff] }
  0x17   : > { %508 = vmatpush.msra.mxu2 %v378_v1  ;;  %v394_v6 = vld [vmem:[%s2031_s2 + $0xb8] sm:$0xff]  ;;  %v393_v8 = vld [vmem:[%s2031_s2 + $0xb0] sm:$0xff]  ;;  %v371_v9 = vld [vmem:[%s2031_s2] sm:$0xff]  ;;  %s1348_s24 = sshll.u32 %s352_s26, 3 }
  0x18   : > { %489 = vmatpush.msra.mxu0 %v373_v2  ;;  %v386_v7 = vld [vmem:[%s2031_s2 + $0x78] sm:$0xff]  ;;  %588 = vmatpush.msra.mxu1 %v394_v6  ;;  %v375_v10 = vld [vmem:[%s2031_s2 + $0x20] sm:$0xff]  ;;  %v385_v11 = vld [vmem:[%s2031_s2 + $0x70] sm:$0xff]  ;;  %s354_s29 = scalar_lea.vmem %s2029_s0, %s1348_s24  ;;  %s358_s16 = scalar_lea.vmem %s2030_s1, %s1348_s24 }
  0x19   : > { %509 = vmatpush.msra.mxu2 %v377_v3  ;;  %548 = vmatpush.msra.mxu3 %v386_v7  ;;  %v382_v12 = vld [vmem:[%s2031_s2 + $0x58] sm:$0xff]  ;;  %v1717_v14 = vld [vmem:[%s354_s29] sm:$0xff]  ;;  %v392_v17 = vld [vmem:[%s2031_s2 + $0xa8] sm:$0xff]  ;;  %s348_s29 = sand.u32 1, %s1543_s10  }
  0x1a   : > { %490 = vmatpush.msra.mxu0 %v372_v4  ;;  %v390_v13 = vld [vmem:[%s2031_s2 + $0x98] sm:$0xff]  ;;  %v361_v15 = vld [vmem:[%s358_s16] sm:$0xff]  ;;  %589 = vmatpush.msra.mxu1 %v393_v8  ;;  %v381_v18 = vld [vmem:[%s2031_s2 + $0x50] sm:$0xff]  ;;  %s1347_s15 = sshll.u32 %s348_s29, 3  ;;  %s1381_s16 = sshll.u32 %s1551_s12, 3 }
  0x1b   : > { %510 = vmatpush.msra.mxu2 %v376_v5  ;;  %549 = vmatpush.msra.mxu3 %v385_v11  ;;  %v447_v16 = vadd.f32 %v361_v15, %v1717_v14  ;;  %v389_v19 = vld [vmem:[%s2031_s2 + $0x90] sm:$0xff]  ;;  %v384_v20 = vld [vmem:[%s2031_s2 + $0x68] sm:$0xff]  ;;  %v391_v21 = vld [vmem:[%s2031_s2 + $0xa0] sm:$0xff]  ;;  %s1255_s17 = scalar_lea.hbm %s2038_s9, %s1381_s16  ;;  %s350_s24 = scalar_lea.vmem [#allocation2], %s1347_s15 }
  0x1c   : > { %491 = vmatpush.msra.mxu0 %v371_v9  ;;  %v380_v22 = vld [vmem:[%s2031_s2 + $0x48] sm:$0xff]  ;;  %590 = vmatpush.msra.mxu1 %v392_v17  ;;  %v383_v24 = vld [vmem:[%s2031_s2 + $0x60] sm:$0xff]  ;;  %v402_v27 = vld [vmem:[%s2031_s2 + $0xf8] sm:$0xff]  ;;  %s1257_s12 = sshll.u32 %s350_s24, 4  ;;  %s1259_s25 = sshll.u32 %s1255_s17, 4  ;;  %s1258_s12 = int_to_ptr.vmem [resolvable:$true] %s1257_s12  ;;  %s1260_s25 = int_to_ptr.hbm [resolvable:$true] %s1259_s25 }
  0x1d   : > { %511 = vmatpush.msra.mxu2 %v375_v10  ;;  %1350 = vmatmul.msk.f32.vlgmr.msra.gmra.mxu0 %vm472_vm0, %v447_v16  ;;  %v388_v23 = vld [vmem:[%s2031_s2 + $0x88] sm:$0xff]  ;;  %v379_v25 = vld [vmem:[%s2031_s2 + $0x40] sm:$0xff]  ;;  %v398_v28 = vld [vmem:[%s2031_s2 + $0xd8] sm:$0xff]  ;;  %s1244_s27 = scalar_lea.sflag [#allocation3], %s348_s29  ;;  %s1495_s28 = sshra.s32 %s1260_s25, 4  ;;  %s1496_s28 = int_to_ptr.hbm [resolvable:$true] %s1495_s28 }
  0x1e   : > { %568 = vmatpush.msrb.mxu0 %v390_v13  ;;  %1351 = vmatmul.msk.f32.vlgmr.msra.gmra.mxu2 %vm472_vm0, %v447_v16  ;;  %v387_v26 = vld [vmem:[%s2031_s2 + $0x80] sm:$0xff]  ;;  %v401_v29 = vld [vmem:[%s2031_s2 + $0xf0] sm:$0xff]  ;;  %v410_v31 = vld [vmem:[%s2031_s2 + $0x138] sm:$0xff]  ;;  %s1497_s16 = scalar_lea.hbm %s1496_s28, 8  ;;  %s1501_s15 = scalar_lea.hbm %s2038_s9, 16 }
  0x1f   : > { %528 = vmatpush.msrb.mxu2 %v382_v12  ;;  %550 = vmatpush.msra.mxu3 %v384_v20  ;;  %v397_v30 = vld [vmem:[%s2031_s2 + $0xd0] sm:$0xff]  ;;  %v406_v32 = vld [vmem:[%s2031_s2 + $0x118] sm:$0xff]  ;;  %v400_v33 = vld [vmem:[%s2031_s2 + $0xe8] sm:$0xff]  ;;  %p1498_p12 = scmp.ne.s32.totalorder %s1496_s28, %s1497_s16  ;;  %p1502_p1 = scmp.lt.s32.totalorder %s1496_s28, %s2038_s9 }
  0x20   : > { %569 = vmatpush.msrb.mxu0 %v389_v19  ;;  %591 = vmatpush.msra.mxu1 %v391_v21  ;;  %v396_v34 = vld [vmem:[%s2031_s2 + $0xc8] sm:$0xff]  ;;  %v409_v35 = vld [vmem:[%s2031_s2 + $0x130] sm:$0xff]  ;;  %v399_v36 = vld [vmem:[%s2031_s2 + $0xe0] sm:$0xff]  ;;  %p1503_p2 = scmp.lt.s32.totalorder %s1501_s15, %s1497_s16 }
  0x21   : > { %529 = vmatpush.msrb.mxu2 %v381_v18  ;;  %1355 = vmatmul.msk.f32.vlgmr.msra.gmra.mxu1 %vm472_vm0, %v447_v16  ;;  %v395_v37 = vld [vmem:[%s2031_s2 + $0xc0] sm:$0xff]  ;;  %v408_v38 = vld [vmem:[%s2031_s2 + $0x128] sm:$0xff]  ;;  %v405_v39 = vld [vmem:[%s2031_s2 + $0x110] sm:$0xff]  ;;  %p1499_p13 = pnand %p1498_p12, %p1652_p4 }
  0x22   : > { %570 = vmatpush.msrb.mxu0 %v388_v23  ;;  %551 = vmatpush.msra.mxu3 %v383_v24  ;;  %v407_v40 = vld [vmem:[%s2031_s2 + $0x120] sm:$0xff]  ;;  %v404_v41 = vld [vmem:[%s2031_s2 + $0x108] sm:$0xff]  ;;  %v418_v43 = vld [vmem:[%s2031_s2 + $0x178] sm:$0xff]  ;;  %p1504_p3 = por %p1503_p2, %p1502_p1 }
  0x23   : > { %530 = vmatpush.msrb.mxu2 %v380_v22  ;;  %1353 = vmatmul.msk.f32.vlgmr.msra.gmra.mxu3 %vm472_vm0, %v447_v16  ;;  %v403_v42 = vld [vmem:[%s2031_s2 + $0x100] sm:$0xff]  ;;  %v414_v44 = vld [vmem:[%s2031_s2 + $0x158] sm:$0xff]  ;;  %v417_v45 = vld [vmem:[%s2031_s2 + $0x170] sm:$0xff]  ;;  %p1500_p0 = pneg %p1499_p13 }
  0x24   : > { %571 = vmatpush.msrb.mxu0 %v387_v26  ;;  %628 = vmatpush.msrb.mxu3 %v402_v27  ;;  %v413_v46 = vld [vmem:[%s2031_s2 + $0x150] sm:$0xff]  ;;  %v416_v47 = vld [vmem:[%s2031_s2 + $0x168] sm:$0xff]  ;;  %v415_v49 = vld [vmem:[%s2031_s2 + $0x160] sm:$0xff] }
  0x25   : > { %531 = vmatpush.msrb.mxu2 %v379_v25  ;;  %1354 = vmatmul.msk.f32.vlgmr.msrb.gmra.mxu0 %vm472_vm0, %v447_v16  ;;  %v412_v48 = vld [vmem:[%s2031_s2 + $0x148] sm:$0xff]  ;;  %v411_v50 = vld [vmem:[%s2031_s2 + $0x140] sm:$0xff]  ;;  %p1505_p5 = pnand %p1504_p3, %p1500_p0 }
  0x26   : > { %1352 = vmatmul.msk.f32.vlgmr.msrb.gmra.mxu2 %vm472_vm0, %v447_v16  ;;  %629 = vmatpush.msrb.mxu3 %v401_v29  ;;  %v1441_v52 = vld [vmem:[%s2035_s6 + $0x5] ss:$0 sm:$0xff]  ;;  %v1440_v53 = vld [vmem:[%s2035_s6] ss:$0 sm:$0xff]  ;;  %v1442_v54 = vld [vmem:[%s2035_s6 + $0x1] ss:$0 sm:$0xff] }
  0x27   : > { %608 = vmatpush.msra.mxu2 %v398_v28  ;;  %683 = vmatpush.msrb.mxu1 %v410_v31  ;;  %v1443_v57 = vld [vmem:[%s2035_s6 + $0x4] ss:$0 sm:$0xff]  ;;  %v1444_v2 = vld [vmem:[%s2035_s6 + $0x3] ss:$0 sm:$0xff]  ;;  %v1446_v4 = vld [vmem:[%s2035_s6 + $0x7] ss:$0 sm:$0xff] }
  0x28   : > { %663 = vmatpush.msra.mxu0 %v406_v32  ;;  %630 = vmatpush.msrb.mxu3 %v400_v33  ;;  %v1445_v6 = vld [vmem:[%s2035_s6 + $0x2] ss:$0 sm:$0xff]  ;;  %v1447_v7 = vld [vmem:[%s2035_s6 + $0x6] ss:$0 sm:$0xff]  ;;  %v1449_v18 = vld [vmem:[%s2035_s6 + $0x8] ss:$0 sm:$0xff] }
  0x29   : > { %609 = vmatpush.msra.mxu2 %v397_v30  ;;  %684 = vmatpush.msrb.mxu1 %v409_v35  ;;  %v1450_v22 = vld [vmem:[%s2035_s6 + $0xb] ss:$0 sm:$0xff]  ;;  %v1451_v23 = vld [vmem:[%s2035_s6 + $0xa] ss:$0 sm:$0xff] }
  0x2a   : > { %631 = vmatpush.msrb.mxu3 %v399_v36  ;;  %664 = vmatpush.msra.mxu0 %v405_v39 }
  0x2b   : > { %610 = vmatpush.msra.mxu2 %v396_v34  ;;  %1357 = vmatmul.msk.f32.vlgmr.msrb.gmra.mxu3 %vm472_vm0, %v447_v16 }
  0x2c   : > { %685 = vmatpush.msrb.mxu1 %v408_v38  ;;  %665 = vmatpush.msra.mxu0 %v404_v41 }
  0x2d   : > { %611 = vmatpush.msra.mxu2 %v395_v37  ;;  %723 = vmatpush.msra.mxu3 %v418_v43 }
  0x2e   : > { %1356 = vmatmul.msk.f32.vlgmr.msra.gmra.mxu2 %vm472_vm0, %v447_v16  ;;  %686 = vmatpush.msrb.mxu1 %v407_v40  ;;  %v1448_v16 = vld [vmem:[%s2035_s6 + $0x9] ss:$0 sm:$0xff] }
  0x2f   : > { %1359 = vmatmul.msk.f32.vlgmr.msrb.gmra.mxu1 %vm472_vm0, %v1717_v14  ;;  %666 = vmatpush.msra.mxu0 %v403_v42 }
  0x30   : > { %1358 = vmatmul.msk.f32.vlgmr.msra.gmra.mxu0 %vm472_vm0, %v1717_v14  ;;  %703 = vmatpush.msrb.mxu2 %v414_v44 }
  0x31   : > { %724 = vmatpush.msra.mxu3 %v417_v45 }
  0x32   : > { %704 = vmatpush.msrb.mxu2 %v413_v46 }
  0x33   : > { %725 = vmatpush.msra.mxu3 %v416_v47 }
  0x34   : > { %705 = vmatpush.msrb.mxu2 %v412_v48 }
  0x35   : > { %726 = vmatpush.msra.mxu3 %v415_v49 }
  0x36   : > { %706 = vmatpush.msrb.mxu2 %v411_v50  ;;  %1361 = vmatmul.msk.f32.vlgmr.msra.gmra.mxu3 %vm472_vm0, %v1717_v14 }
  0x37   : > { %1360 = vmatmul.msk.f32.vlgmr.msrb.gmra.mxu2 %vm472_vm0, %v1717_v14 }
  0x9a   : > { %v493_v51 = vpop.f32.mrf.mxu0 }
  0x9b   : > { %v494_v58 = vadd.f32 %v1440_v53, %v493_v51 }
  0x9d   : > { %v731_v0 = vmul.f32 0.35355338, %v494_v58 }
  0x9e   : > { %v593_v55 = vpop.f32.mrf.mxu1 }
  0x9f   : > { %v594_v56 = vadd.f32 %v1441_v52, %v593_v55 }
  0xa1   : > { %v513_v59 = vpop.f32.mrf.mxu2  ;;  %1364 = vmatpush.xpose.msk.msra.mxu1 %vm735_vm1, %v594_v56 }
  0xa2   : > { %v514_v60 = vadd.f32 %v1442_v54, %v513_v59  ;;  %v573_v61 = vpop.f32.mrf.mxu0 }
  0xa3   : > { %v574_v63 = vadd.f32 %v1443_v57, %v573_v61 }
  0xa4   : > { %v732_v62 = vmul.f32 0.35355338, %v514_v60 }
  0xa5   : > { %1362 = vmatpush.xpose.msk.msrb.mxu0 %vm735_vm1, %v574_v63 }
  0xa6   : > { %1365 = vmatmul.msk.f32.vlgmr.msra.gmra.mxu1 %vm735_vm1, %v732_v62  ;;  %v553_v1 = vpop.f32.mrf.mxu3 }
  0xa7   : > { %v554_v5 = vadd.f32 %v1444_v2, %v553_v1 }
  0xa8   : > { %1363 = vmatmul.msk.f32.vlgmr.msrb.gmra.mxu0 %vm735_vm1, %v731_v0 }
  0xa9   : > { %v533_v3 = vpop.f32.mrf.mxu2  ;;  %v734_v10 = vmul.f32 0.35355338, %v554_v5 }
  0xaa   : > { %v534_v11 = vadd.f32 %v1445_v6, %v533_v3 }
  0xac   : > { %v733_v15 = vmul.f32 0.35355338, %v534_v11  ;;  %v688_v17 = vpop.f32.mrf.mxu1 }
  0xad   : > { %v689_v19 = vadd.f32 %v1448_v16, %v688_v17  ;;  %v668_v20 = vpop.f32.mrf.mxu0 }
  0xae   : > { %v633_v8 = vpop.f32.mrf.mxu3  ;;  %v669_v21 = vadd.f32 %v1449_v18, %v668_v20 }
  0xaf   : > { %v634_v9 = vadd.f32 %v1446_v4, %v633_v8  ;;  %977 = vmatpush.msrb.mxu1 %v689_v19 }
  0xb0   : > { %954 = vmatpush.msra.mxu0 %v669_v21 }
  0xb1   : > { %v613_v12 = vpop.f32.mrf.mxu2  ;;  %1368 = vmatpush.xpose.msk.msrb.mxu3 %vm735_vm1, %v634_v9 }
  0xb2   : > { %v614_v13 = vadd.f32 %v1447_v7, %v613_v12 }
  0xb4   : > { %1366 = vmatpush.xpose.msk.msra.mxu2 %vm735_vm1, %v614_v13  ;;  %1369 = vmatmul.msk.f32.vlgmr.msrb.gmra.mxu3 %vm735_vm1, %v734_v10 }
  0xb7   : > { %1367 = vmatmul.msk.f32.vlgmr.msra.gmra.mxu2 %vm735_vm1, %v733_v15 }
  0xb9   : > { %v728_v24 = vpop.f32.mrf.mxu3 }
  0xba   : > { %v729_v25 = vadd.f32 %v1450_v22, %v728_v24  ;;  %v708_v26 = vpop.f32.mrf.mxu2 }
  0xbb   : > { %v709_v27 = vadd.f32 %v1451_v23, %v708_v26 }
  0xbc   : > { %1023 = vmatpush.msra.mxu3 %v729_v25 }
  0xbd   : > { %1000 = vmatpush.msrb.mxu2 %v709_v27 }
 0x123   : > { %v785_v30 = vpop.f32.mrf.mxu1 }
 0x124   : > { %v843_v31 = vsel %vm735_vm1, %v785_v30, -inf }
 0x125   : > { %v759_v28 = vpop.f32.mrf.mxu0 }
 0x126   : > { %v840_v29 = vsel %vm735_vm1, %v759_v28, -inf }
 0x127   : > { %841 = vmax.xlane.f32.xlu1 %v840_v29 }
 0x12f   : > { %844 = vmax.xlane.f32.xlu1 %v843_v31 }
 0x137   : > { %v837_v34 = vpop.f32.mrf.mxu3 }
 0x138   : > { %v849_v35 = vsel %vm735_vm1, %v837_v34, -inf }
 0x13a   : > { %v811_v32 = vpop.f32.mrf.mxu2 }
 0x13b   : > { %v846_v33 = vsel %vm735_vm1, %v811_v32, -inf }
 0x13c   : > { %847 = vmax.xlane.f32.xlu0 %v846_v33 }
 0x144   : > { %850 = vmax.xlane.f32.xlu0 %v849_v35 }
 0x19a   : > { %v842_v36 = vpop.xlane.xlu1 %841 }
 0x19b   : > { %v852_v37 = vsub.f32 %v759_v28, %v842_v36 }
 0x19d   : > { %v856_v38 = vmul.f32 1.442695, %v852_v37 }
 0x19f   : > { %1459 = vpow2.f32 %v856_v38 }
 0x1a2   : > { %v845_v39 = vpop.xlane.xlu1 %844 }
 0x1a3   : > { %v853_v40 = vsub.f32 %v785_v30, %v845_v39 }
 0x1a5   : > { %v1460_v41 = vpop.eup %1459  ;;  %v858_v42 = vmul.f32 1.442695, %v853_v40 }
 0x1a6   : > { %v864_v43 = vsel %vm735_vm1, %v1460_v41, 0.0 }
 0x1a7   : > { %1461 = vpow2.f32 %v858_v42  ;;  %865 = vadd.xlane.f32.xlu0 %v864_v43  ;;  %v420_v42 = vld [vmem:[%s2032_s3 + $0x8] sm:$0xff]  ;;  %v421_v43 = vld [vmem:[%s2032_s3 + $0x10] sm:$0xff] }
 0x1a8   : > { %1069 = vmatpush.msra.mxu1 %v420_v42  ;;  %1092 = vmatpush.msra.mxu2 %v421_v43  ;;  %v1456_v43 = vld [vmem:[%s2036_s7 + $0x5] ss:$0 sm:$0xff] }
 0x1ad   : > { %v1462_v44 = vpop.eup %1461 }
 0x1ae   : > { %v867_v46 = vsel %vm735_vm1, %v1462_v44, 0.0 }
 0x1af   : > { %v848_v45 = vpop.xlane.xlu0 %847  ;;  %868 = vadd.xlane.f32.xlu1 %v867_v46 }
 0x1b0   : > { %v854_v47 = vsub.f32 %v811_v32, %v848_v45 }
 0x1b2   : > { %v860_v48 = vmul.f32 1.442695, %v854_v47 }
 0x1b4   : > { %1463 = vpow2.f32 %v860_v48 }
 0x1b7   : > { %v851_v49 = vpop.xlane.xlu0 %850 }
 0x1b8   : > { %v855_v50 = vsub.f32 %v837_v34, %v851_v49 }
 0x1ba   : > { %v1888_v51 = vpop.eup %1463  ;;  %v862_v52 = vmul.f32 1.442695, %v855_v50 }
 0x1bb   : > { %v870_v53 = vsel %vm735_vm1, %v1888_v51, 0.0 }
 0x1bc   : > { %1465 = vpow2.f32 %v862_v52  ;;  %871 = vadd.xlane.f32.xlu2 %v870_v53 }
 0x1c2   : > { %v1892_v54 = vpop.eup %1465 }
 0x1c3   : > { %v873_v55 = vsel %vm735_vm1, %v1892_v54, 0.0 }
 0x1c4   : > { %874 = vadd.xlane.f32.xlu2 %v873_v55 }
 0x21a   : > { %v866_v56 = vpop.xlane.xlu0 %865 }
 0x21b   : > { %1467 = vrcp.f32 %v866_v56  ;;  %v887_v61 = vand.u32 2147483648, %v866_v56  ;;  %v885_v63 = vand.u32 2147483647, %v866_v56  ;;  %vm881_vm3 = vweird.f32 %v866_v56 }
 0x21d   : > { %v888_v2 = vor.u32 1.1754944e-38, %v887_v61  ;;  %vm886_vm5 = vcmp.eq.f32.partialorder %v885_v63, 8.507059e+37 }
 0x221   : > { %v1468_v57 = vpop.eup %1467 }
 0x222   : > { %v877_v58 = vmul.f32 %v1468_v57, %v866_v56  ;;  %v869_v59 = vpop.xlane.xlu1 %868  ;;  %vm882_vm2 = vweird.f32 %v1468_v57 }
 0x223   : > { %1469 = vrcp.f32 %v869_v59  ;;  %vm883_vm4 = vmor %vm881_vm3, %vm882_vm2  ;;  %v901_v8 = vand.u32 2147483648, %v869_v59  ;;  %v899_v10 = vand.u32 2147483647, %v869_v59  ;;  %vm895_vm7 = vweird.f32 %v869_v59 }
 0x224   : > { %v878_v60 = vsub.f32 1.0, %v877_v58  ;;  %v1452_v58 = vld [vmem:[%s2036_s7 + $0x4] ss:$0 sm:$0xff] }
 0x225   : > { %v902_v13 = vor.u32 1.1754944e-38, %v901_v8  ;;  %vm900_vm9 = vcmp.eq.f32.partialorder %v899_v10, 8.507059e+37 }
 0x226   : > { %v879_v62 = vmul.f32 %v1468_v57, %v878_v60 }
 0x228   : > { %v880_v0 = vadd.f32 %v1468_v57, %v879_v62 }
 0x229   : > { %v1470_v1 = vpop.eup %1469 }
 0x22a   : > { %v884_v3 = vsel %vm883_vm4, %v1468_v57, %v880_v0  ;;  %v891_v4 = vmul.f32 %v1470_v1, %v869_v59  ;;  %vm896_vm6 = vweird.f32 %v1470_v1  ;;  %v1561_v0 = vmov 32.0  }
 0x22b   : > { %v889_v5 = vsel %vm886_vm5, %v888_v2, %v884_v3  ;;  %vm897_vm8 = vmor %vm895_vm7, %vm896_vm6  ;;  %vm1191_vm7 = vcmask 523264  }
 0x22c   : > { %v892_v6 = vsub.f32 1.0, %v891_v4  ;;  %v932_v7 = vmul.f32 %v1460_v41, %v889_v5  ;;  %v419_v41 = vld [vmem:[%s2032_s3] sm:$0xff] }
 0x22d   : > { %1046 = vmatpush.msrb.mxu0 %v419_v41 }
 0x22e   : > { %v893_v9 = vmul.f32 %v1470_v1, %v892_v6  ;;  %1370 = vmatmul.msk.f32.vlgmr.msra.gmra.mxu0 %vm735_vm1, %v932_v7 }
 0x22f   : > { %v872_v11 = vpop.xlane.xlu2 %871 }
 0x230   : > { %1471 = vrcp.f32 %v872_v11  ;;  %v894_v12 = vadd.f32 %v1470_v1, %v893_v9  ;;  %v915_v22 = vand.u32 2147483648, %v872_v11  ;;  %v913_v24 = vand.u32 2147483647, %v872_v11 }
 0x231   : > { %vm909_vm11 = vweird.f32 %v872_v11 }
 0x232   : > { %v898_v15 = vsel %vm897_vm8, %v1470_v1, %v894_v12  ;;  %v916_v27 = vor.u32 1.1754944e-38, %v915_v22  ;;  %vm914_vm13 = vcmp.eq.f32.partialorder %v913_v24, 8.507059e+37  ;;  %v425_v12 = vld [vmem:[%s2033_s4 + $0x10] sm:$0xff] }
 0x233   : > { %v903_v16 = vsel %vm900_vm9, %v902_v13, %v898_v15  ;;  %v424_v13 = vld [vmem:[%s2033_s4 + $0x8] sm:$0xff]  ;;  %v423_v15 = vld [vmem:[%s2033_s4] sm:$0xff] }
 0x234   : > { %v933_v17 = vmul.f32 %v1462_v44, %v903_v16  ;;  %v422_v44 = vld [vmem:[%s2032_s3 + $0x18] sm:$0xff] }
 0x235   : > { %1115 = vmatpush.msrb.mxu3 %v422_v44  ;;  %v434_v16 = vld [vmem:[%s2034_s5 + $0x38] sm:$0xff] }
 0x236   : > { %v1472_v18 = vpop.eup %1471  ;;  %1371 = vmatmul.msk.f32.vlgmr.msrb.gmra.mxu1 %vm735_vm1, %v933_v17  ;;  %v433_v17 = vld [vmem:[%s2034_s5 + $0x30] sm:$0xff] }
 0x237   : > { %v905_v19 = vmul.f32 %v1472_v18, %v872_v11  ;;  %v875_v20 = vpop.xlane.xlu2 %874  ;;  %vm910_vm10 = vweird.f32 %v1472_v18  ;;  %v426_v11 = vld [vmem:[%s2033_s4 + $0x18] sm:$0xff]  ;;  %1203 = vmatpush.msrb.mxu1 %v434_v16 }
 0x238   : > { %1473 = vrcp.f32 %v875_v20  ;;  %vm911_vm12 = vmor %vm909_vm11, %vm910_vm10  ;;  %v929_v33 = vand.u32 2147483648, %v875_v20  ;;  %v927_v35 = vand.u32 2147483647, %v875_v20  ;;  %vm923_vm15 = vweird.f32 %v875_v20  ;;  %1181 = vmatpush.msra.mxu0 %v426_v11 }
 0x239   : > { %v906_v21 = vsub.f32 1.0, %v905_v19  ;;  %1475 = vrcp.f32 %v1561_v0  ;;  %1204 = vmatpush.msrb.mxu1 %v433_v17 }
 0x23a   : > { %v930_v37 = vor.u32 1.1754944e-38, %v929_v33  ;;  %vm928_vm3 = vcmp.eq.f32.partialorder %v927_v35, 8.507059e+37  ;;  %1182 = vmatpush.msra.mxu0 %v425_v12  ;;  %v1454_v33 = vld [vmem:[%s2036_s7 + $0x1] ss:$0 sm:$0xff] }
 0x23b   : > { %v907_v23 = vmul.f32 %v1472_v18, %v906_v21  ;;  %v431_v21 = vld [vmem:[%s2034_s5 + $0x20] sm:$0xff] }
 0x23c   : > { %1183 = vmatpush.msra.mxu0 %v424_v13 }
 0x23d   : > { %v908_v25 = vadd.f32 %v1472_v18, %v907_v23  ;;  %v430_v23 = vld [vmem:[%s2034_s5 + $0x18] sm:$0xff] }
 0x23e   : > { %v1474_v26 = vpop.eup %1473  ;;  %1184 = vmatpush.msra.mxu0 %v423_v15 }
 0x23f   : > { %v912_v28 = vsel %vm911_vm12, %v1472_v18, %v908_v25  ;;  %v919_v29 = vmul.f32 %v1474_v26, %v875_v20  ;;  %vm924_vm14 = vweird.f32 %v1474_v26  ;;  %v1476_v1 = vpop.eup %1475  ;;  %v432_v18 = vld [vmem:[%s2034_s5 + $0x28] sm:$0xff] }
 0x240   : > { %v917_v30 = vsel %vm914_vm13, %v916_v27, %v912_v28  ;;  %vm925_vm2 = vmor %vm923_vm15, %vm924_vm14  ;;  %v1134_v2 = vmul.f32 32.0, %v1476_v1  ;;  %1205 = vmatpush.msrb.mxu1 %v432_v18 }
 0x241   : > { %v920_v31 = vsub.f32 1.0, %v919_v29  ;;  %v934_v32 = vmul.f32 %v1888_v51, %v917_v30  ;;  %v1453_v30 = vld [vmem:[%s2036_s7] ss:$0 sm:$0xff] }
 0x242   : > { %v1135_v3 = vsub.f32 1.0, %v1134_v2  ;;  %1206 = vmatpush.msrb.mxu1 %v431_v21 }
 0x243   : > { %v921_v34 = vmul.f32 %v1474_v26, %v920_v31  ;;  %1372 = vmatmul.msk.f32.vlgmr.msrb.gmra.mxu2 %vm735_vm1, %v934_v32 }
 0x244   : > { %v1136_v4 = vmul.f32 %v1476_v1, %v1135_v3  ;;  %1207 = vmatpush.msrb.mxu1 %v430_v23 }
 0x245   : > { %v922_v36 = vadd.f32 %v1474_v26, %v921_v34 }
 0x246   : > { %v1137_v5 = vadd.f32 %v1476_v1, %v1136_v4 }
 0x247   : > { %v926_v38 = vsel %vm925_vm2, %v1474_v26, %v922_v36  ;;  %v429_v36 = vld [vmem:[%s2034_s5 + $0x10] sm:$0xff] }
 0x248   : > { %v931_v39 = vsel %vm928_vm3, %v930_v37, %v926_v38  ;;  %1208 = vmatpush.msrb.mxu1 %v429_v36  ;;  %v428_v37 = vld [vmem:[%s2034_s5 + $0x8] sm:$0xff]  ;;  %v427_v38 = vld [vmem:[%s2034_s5] sm:$0xff] }
 0x249   : > { %v935_v40 = vmul.f32 %v1892_v54, %v931_v39  ;;  %v1455_v39 = vld [vmem:[%s2037_s8] ss:$0 sm:$0xff] }
 0x24a   : > { %1209 = vmatpush.msrb.mxu1 %v428_v37 }
 0x24b   : > { %1373 = vmatmul.msk.f32.vlgmr.msra.gmra.mxu3 %vm735_vm1, %v935_v40 }
 0x24c   : > { %1210 = vmatpush.msrb.mxu1 %v427_v38 }
 0x2ab   : > { %v956_v45 = vpop.f32.mrf.mxu0 }
 0x2ac   : > { %1374 = vmatmul.msk.f32.vlgmr.msrb.gmra.mxu0 %vm735_vm1, %v956_v45 }
 0x2b3   : > { %v979_v46 = vpop.f32.mrf.mxu1 }
 0x2b4   : > { %1375 = vmatmul.msk.f32.vlgmr.msra.gmra.mxu1 %vm735_vm1, %v979_v46 }
 0x2c6   : > { %v1002_v47 = vpop.f32.mrf.mxu2 }
 0x2c7   : > { %1376 = vmatmul.msk.f32.vlgmr.msra.gmra.mxu2 %vm735_vm1, %v1002_v47 }
 0x2ce   : > { %v1025_v48 = vpop.f32.mrf.mxu3 }
 0x2cf   : > { %1377 = vmatmul.msk.f32.vlgmr.msrb.gmra.mxu3 %vm735_vm1, %v1025_v48  ;;  %vm1138_vm1 = vweird.f32 %v1476_v1 }
 0x2d0   : > { %v1927_v6 = vsel %vm1138_vm1, %v1476_v1, %v1137_v5  ;;  %v1458_v1 = vld [vmem:[%s2036_s7 + $0x3] ss:$0 sm:$0xff] }
 0x329   : > { %v1048_v50 = vpop.f32.mrf.mxu0 }
 0x32a   : > { %v1120_v53 = vsel %vm472_vm0, %v1048_v50, 0.0 }
 0x331   : > { %v1071_v49 = vpop.f32.mrf.mxu1 }
 0x332   : > { %v1121_v52 = vsel %vm472_vm0, %v1071_v49, 0.0 }
 0x333   : > { %v1122_v55 = vadd.f32 %v1121_v52, %v1120_v53 }
 0x34a   : > { %v1094_v51 = vpop.f32.mrf.mxu2 }
 0x34b   : > { %v1123_v54 = vsel %vm472_vm0, %v1094_v51, 0.0 }
 0x34c   : > { %v1124_v56 = vadd.f32 %v1123_v54, %v1122_v55 }
 0x352   : > { %v1117_v57 = vpop.f32.mrf.mxu3 }
 0x353   : > { %v1125_v59 = vsel %vm472_vm0, %v1117_v57, 0.0 }
 0x354   : > { %v1126_v60 = vadd.f32 %v1125_v59, %v1124_v56 }
 0x356   : > { %v1128_v61 = vadd.f32 %v1452_v58, %v1126_v60 }
 0x358   : > { %v1129_v62 = vadd.f32 %v1128_v61, %v1717_v14 }
 0x35a   : > { %v1130_v63 = vsel %vm472_vm0, %v1129_v62, 0.0 }
 0x35b   : > { %1131 = vadd.xlane.f32.xlu2 %v1130_v63 }
 0x3ce   : > { %v1132_v7 = vpop.xlane.xlu2 %1131 }
 0x3cf   : > { %v1140_v8 = vmul.f32 %v1927_v6, %v1132_v7 }
 0x3d1   : > { %v1141_v9 = vsub.f32 %v1129_v62, %v1140_v8  ;;  %v1457_v62 = vld [vmem:[%s2036_s7 + $0x2] ss:$0 sm:$0xff] }
 0x3d3   : > { %v1142_v10 = vmul.f32 %v1141_v9, %v1141_v9 }
 0x3d5   : > { %v1143_v14 = vsel %vm472_vm0, %v1142_v10, 0.0 }
 0x3d6   : > { %1144 = vadd.xlane.f32.xlu0 %v1143_v14 }
 0x449   : > { %v1145_v19 = vpop.xlane.xlu0 %1144 }
 0x44a   : > { %v1146_v20 = vmul.f32 %v1145_v19, %v1927_v6 }
 0x44c   : > { %v1147_v22 = vadd.f32 1e-05, %v1146_v20 }
 0x44e   : > { %1477 = vrsqrt.f32 %v1147_v22  ;;  %vm1154_vm5 = vweird.f32 %v1147_v22 }
 0x454   : > { %v1478_v24 = vpop.eup %1477 }
 0x455   : > { %v1149_v25 = vmul.f32 %v1478_v24, %v1147_v22  ;;  %vm1155_vm4 = vweird.f32 %v1478_v24 }
 0x456   : > { %vm1156_vm6 = vmor %vm1154_vm5, %vm1155_vm4 }
 0x457   : > { %v1150_v26 = vmul.f32 %v1478_v24, %v1149_v25 }
 0x459   : > { %v1151_v27 = vmul.f32 0.5, %v1150_v26 }
 0x45b   : > { %v1152_v28 = vsub.f32 1.5, %v1151_v27 }
 0x45d   : > { %v1153_v29 = vmul.f32 %v1478_v24, %v1152_v28 }
 0x45f   : > { %v1157_v31 = vsel %vm1156_vm6, %v1478_v24, %v1153_v29 }
 0x460   : > { %v1158_v32 = vmul.f32 %v1157_v31, %v1141_v9 }
 0x462   : > { %v1160_v34 = vmul.f32 %v1453_v30, %v1158_v32 }
 0x464   : > { %v1162_v35 = vadd.f32 %v1454_v33, %v1160_v34 }
 0x466   : > { %1378 = vmatmul.msk.f32.vlgmr.msra.gmra.mxu0 %vm472_vm0, %v1162_v35 }
 0x4e3   : > { %v1186_v40 = vpop.f32.mrf.mxu0 }
 0x4e4   : > { %v1187_v41 = vadd.f32 %v1455_v39, %v1186_v40 }
 0x4e6   : > { %v1189_v42 = vmax.f32 %v1187_v41, 0.0 }
 0x4e8   : > { %1379 = vmatmul.msk.f32.vlgmr.msrb.gmra.mxu1 %vm1191_vm7, %v1189_v42 }
 0x565   : > { %v1212_v44 = vpop.f32.mrf.mxu1 }
 0x566   : > { %v1213_v45 = vadd.f32 %v1456_v43, %v1212_v44 }
 0x568   : > { %v1215_v46 = vadd.f32 %v1213_v45, %v1162_v35 }
 0x56a   : > { %v1216_v47 = vsel %vm472_vm0, %v1215_v46, 0.0 }
 0x56b   : > { %1217 = vadd.xlane.f32.xlu1 %v1216_v47 }
 0x5de   : > { %v1218_v48 = vpop.xlane.xlu1 %1217 }
 0x5df   : > { %v1219_v49 = vmul.f32 %v1218_v48, %v1927_v6 }
 0x5e1   : > { %v1220_v50 = vsub.f32 %v1215_v46, %v1219_v49 }
 0x5e3   : > { %v1221_v51 = vmul.f32 %v1220_v50, %v1220_v50 }
 0x5e5   : > { %v1222_v52 = vsel %vm472_vm0, %v1221_v51, 0.0 }
 0x5e6   : > { %1223 = vadd.xlane.f32.xlu2 %v1222_v52 }
 0x659   : > { %v1224_v53 = vpop.xlane.xlu2 %1223 }
 0x65a   : > { %v1225_v54 = vmul.f32 %v1224_v53, %v1927_v6 }
 0x65c   : > { %v1226_v55 = vadd.f32 1e-05, %v1225_v54 }
 0x65e   : > { %1479 = vrsqrt.f32 %v1226_v55  ;;  %vm1233_vm9 = vweird.f32 %v1226_v55 }
 0x664   : > { %v1480_v56 = vpop.eup %1479 }
 0x665   : > { %v1228_v57 = vmul.f32 %v1480_v56, %v1226_v55  ;;  %vm1234_vm8 = vweird.f32 %v1480_v56 }
 0x666   : > { %vm1235_vm10 = vmor %vm1233_vm9, %vm1234_vm8 }
 0x667   : > { %v1229_v58 = vmul.f32 %v1480_v56, %v1228_v57 }
 0x669   : > { %v1230_v59 = vmul.f32 0.5, %v1229_v58 }
 0x66b   : > { %v1231_v60 = vsub.f32 1.5, %v1230_v59 }
 0x66d   : > { %v1232_v61 = vmul.f32 %v1480_v56, %v1231_v60 }
 0x66f   : > { %v1236_v63 = vsel %vm1235_vm10, %v1480_v56, %v1232_v61 }
 0x670   : > { %v1237_v0 = vmul.f32 %v1236_v63, %v1220_v50 }
 0x672   : > { %v1239_v2 = vmul.f32 %v1457_v62, %v1237_v0 }
 0x674   : > { %v1241_v3 = vadd.f32 %v1458_v1, %v1239_v2 }
 0x676   : > { %1242 = vst.msk [vmem:[%s350_s24] sm:$0xff] %vm472_vm0, %v1241_v3 }
 0x677   : > { %1508 = shalt.err (!%p1505_p5)
}
 0x678   : > { %1384 = dma.vmem_to_hbm [thread:$0]  (%p1652_p4), %s1258_s12, 128, %s1260_s25, %s1244_s27  }
 0x679 PF: > { %p1390_p6 = scmp.ge.s32.totalorder %s1559_s14, 2  ;;  %s1271_s29 = sand.u32 1, %s1539_s30  }
 0x67a   : > { %s1272_s17 = scalar_lea.sflag [#allocation3], %s1271_s29 }
 0x67b   : > { %p1387_p7 = pnand %p1390_p6, %p1659_p8 }
 0x67d   : > { %p1388_p9 = pneg %p1387_p7 }
 0x67f   : > { %1534 = dma.done.wait (%p1388_p9), %s1272_s17, 128  }
 0x680   : > { %1536 = vsyncadd (%p1388_p9), %s1272_s17, 4294967168  ;;  %s22_s14 = sadd.s32 1, %s1559_s14   ;;  %s2046_s22 = sld [smem:[#allocation7_spill]] }
 0x681   : > { %p19_p10 = scmp.ge.s32.totalorder %s22_s14, 4   ;;  %s2047_s12 = sld [smem:[#allocation5_spill]] }
 0x682   : > { %s2048_s13 = sld [smem:[#allocation6_spill]]  ;;  %s2049_s30 = smov %s1543_s10 }
 0x683   : > { %s2050_s10 = smov %s1547_s11  ;;  %21 = sbr.rel (!%p19_p10) target bundleno = 4 (0x4), region = 95 }
 0x686   : > { %s2051_s11 = smov %s2046_s22 }
 0x688   :  { %1278 = vsyncpa [#allocation3], 1 }
 0x689   :  { %1280 = vsyncpa [#allocation3 + $0x1], 1 }

</bundles_post_ra>
